<compile_context>
chip_gen: v6e
topology: v6e:2x2x1
jax: 0.10.0
libtpu: 0.0.40
codegen_flags: <defaults>
</compile_context>

<pallas_src>
import functools

import jax
import jax.numpy as jnp
from jax import lax
from jax.experimental import pallas as pl
from jax.experimental.pallas import tpu as pltpu


def conv1x1_kernel(x_ref, w_ref, b_ref, o_ref):
    # x_ref: (M, Cin) f32, w_ref: (Cout, Cin) bf16, b_ref: (1, Cout) f32.
    # Contract the last dim of each (trans-B GEMV) on the MXU with f32 acc.
    x_bf16 = x_ref[...].astype(jnp.bfloat16)
    acc = lax.dot_general(
        x_bf16,
        w_ref[...],
        dimension_numbers=(((1,), (1,)), ((), ())),
        preferred_element_type=jnp.float32,
    )  # (M, Cout) f32
    o_ref[...] = (acc + b_ref[...]).astype(o_ref.dtype)


def prepare_conv1x1_params(weight, bias):
    """One-time parameter prep (hoisted out of the per-call path).

    weight: (Cout, Cin, 1, 1) -> bf16 (Cout, Cin) lane-dense slab
    bias:   (Cout,)           -> f32  (1, Cout)
    """
    Cout, Cin = weight.shape[0], weight.shape[1]
    wm = weight.reshape(Cout, Cin).astype(jnp.bfloat16)
    bm = bias.reshape(1, Cout).astype(jnp.float32)
    return wm, bm


@functools.partial(jax.jit, static_argnames=())
def conv2d_1x1(x_nchw, wm, bm):
    """1x1 conv (stride 1, no padding) == channel matmul, single-block Pallas.

    x_nchw: (N, Cin, H, W)   wm: (Cout, Cin) bf16   bm: (1, Cout) f32
    returns (N, Cout, H, W) in x_nchw.dtype
    """
    N, Cin, H, W = x_nchw.shape
    Cout = wm.shape[0]
    M = N * H * W

    # Glue: NCHW -> (M, Cin).  With H = W = 1 this is a pure bitcast.
    xm = jnp.transpose(x_nchw, (0, 2, 3, 1)).reshape(M, Cin)

    x_item = jnp.dtype(x_nchw.dtype).itemsize
    bytes_accessed = (
        M * Cin * x_item            # activation (~9 KiB)
        + Cout * Cin * 2            # bf16 weight (dominant, ~432 KiB)
        + Cout * 4                  # bias
        + M * Cout * x_item         # out
    )
    cost = pl.CostEstimate(
        flops=2 * M * Cin * Cout,
        bytes_accessed=bytes_accessed,
        transcendentals=0,
    )

    out = pl.pallas_call(
        conv1x1_kernel,
        out_shape=jax.ShapeDtypeStruct((M, Cout), x_nchw.dtype),
        # No grid: one block, full extents, single DMA per operand.
        in_specs=[
            pl.BlockSpec((M, Cin), lambda: (0, 0)),      # x (whole array)
            pl.BlockSpec((Cout, Cin), lambda: (0, 0)),   # w (whole array)
            pl.BlockSpec((1, Cout), lambda: (0, 0)),     # bias
        ],
        out_specs=pl.BlockSpec((M, Cout), lambda: (0, 0)),
        cost_estimate=cost,
    )(xm, wm, bm)

    # Glue: (M, Cout) -> NCHW (bitcast for H = W = 1).
    return jnp.transpose(out.reshape(N, H, W, Cout), (0, 3, 1, 2))


if __name__ == "__main__":
    # Shapes implied by the module's forward: x671 = randn([1, 2304, 1, 1])
    N, Cin, H, W = 1, 2304, 1, 1
    Cout = 96

    key = jax.random.PRNGKey(0)
    kx, kw, kb = jax.random.split(key, 3)

    x = jax.random.normal(kx, (N, Cin, H, W), dtype=jnp.float32)
    # Deterministic synthetic parameters (Conv2d(2304, 96, 1, 1) shapes).
    weight = jax.random.normal(kw, (Cout, Cin, 1, 1), dtype=jnp.float32) * 0.02
    bias = jax.random.normal(kb, (Cout,), dtype=jnp.float32) * 0.02

    # Parameter prep happens once, outside the per-call / jitted hot path.
    wm, bm = prepare_conv1x1_params(weight, bias)
    wm, bm = jax.block_until_ready((wm, bm))

    y = conv2d_1x1(x, wm, bm)
    y = jax.block_until_ready(y)

    # Reference checks (plain JAX).
    w2d = weight.reshape(Cout, Cin)
    # (a) vs full-f32 reference: loosened tolerance for bf16 weights.
    ref_f32 = jnp.einsum("nchw,oc->nohw", x, w2d) + bias.reshape(1, Cout, 1, 1)
    # (b) vs reference that uses the same bf16-rounded inputs with f32 acc.
    ref_bf16 = (
        jnp.einsum(
            "nchw,oc->nohw",
            x.astype(jnp.bfloat16).astype(jnp.float32),
            w2d.astype(jnp.bfloat16).astype(jnp.float32),
        )
        + bias.reshape(1, Cout, 1, 1)
    )

    assert y.shape == (N, Cout, H, W)
    assert jnp.allclose(y, ref_bf16, atol=2e-2, rtol=2e-2), "mismatch vs bf16 reference"
    assert jnp.allclose(y, ref_f32, atol=6e-2, rtol=6e-2), "mismatch vs f32 reference"

    print("KERNEL_OK")
</pallas_src>

<mosaic_0001>
module attributes {stable_mosaic.version = 11 : i64} {
  func.func @conv1x1_kernel(%arg0: memref<1x2304xf32, #tpu.memory_space<vmem>>, %arg1: memref<96x2304xbf16, #tpu.memory_space<vmem>>, %arg2: memref<1x96xf32, #tpu.memory_space<vmem>>, %arg3: memref<1x96xf32, #tpu.memory_space<vmem>>) attributes {dimension_semantics = [], scalar_prefetch = 0 : i64, scratch_operands = 0 : i64, tpu.core_type = #tpu.core_type<tc>} {
    %c0 = arith.constant 0 : index
    %c0_0 = arith.constant 0 : index
    %0 = vector.load %arg0[%c0, %c0_0] : memref<1x2304xf32, #tpu.memory_space<vmem>>, vector<1x2304xf32>
    %1 = arith.truncf %0 : vector<1x2304xf32> to vector<1x2304xbf16>
    %c0_1 = arith.constant 0 : index
    %c0_2 = arith.constant 0 : index
    %2 = vector.load %arg1[%c0_1, %c0_2] : memref<96x2304xbf16, #tpu.memory_space<vmem>>, vector<96x2304xbf16>
    %cst = arith.constant dense<0.000000e+00> : vector<1x96xf32>
    %3 = tpu.matmul %1, %2, %cst {dimension_numbers = #tpu.dot_dimension_numbers<[1], [1], [0], [0], [0, 0, 1, 0], [], []>} : vector<1x2304xbf16>, vector<96x2304xbf16>, vector<1x96xf32> -> vector<1x96xf32>
    %c0_3 = arith.constant 0 : index
    %c0_4 = arith.constant 0 : index
    %4 = vector.load %arg2[%c0_3, %c0_4] : memref<1x96xf32, #tpu.memory_space<vmem>>, vector<1x96xf32>
    %5 = arith.addf %3, %4 : vector<1x96xf32>
    %c0_5 = arith.constant 0 : index
    %c0_6 = arith.constant 0 : index
    %6 = vector.load %arg3[%c0_5, %c0_6] : memref<1x96xf32, #tpu.memory_space<vmem>>, vector<1x96xf32>
    tpu.vector_store %arg3[%c0_5, %c0_6], %5 {strides = array<i32>} : memref<1x96xf32, #tpu.memory_space<vmem>>, vector<1x96xf32>,
    return
  }
}

</mosaic_0001>

<bundles_post_ra>
// kernel: conv2d_1x1.1
= control target key start
LH: loop header
LB: loop body
LE: loop exit
PB: predicated region body
PF: predicated region fallthrough
CT: control target
= control target key end

     0   :  { %8 = vsyncpa [#allocation3], 0  ;;  %s1631_s0 = inlined_call_operand.hbm [shape: f32[1,2304], index: 0, kind: input, shape index: {}]   ;;  %s1632_s1 = inlined_call_operand.hbm [shape: bf16[96,2304], index: 1, kind: input, shape index: {}]   ;;  %s1633_s2 = inlined_call_operand.vmem [shape: f32[1,96], index: 2, kind: input, shape index: {}]   ;;  %s1634_s3 = inlined_call_operand.hbm [shape: f32[1,96], index: 3, kind: output, shape index: {}]  }
   0x1   :  { %9 = vsyncpa [#allocation6], 0 }
   0x2   :  { %10 = vsyncpa [#allocation4], 0  ;;  %s1524_s12 = smov [#allocation2]   ;;  %s1525_s14 = smov [#allocation5]  }
   0x3   :  { %s17_s13 = sshll.u32 %s1524_s12, 4  ;;  %s26_s15 = sshll.u32 %s1525_s14, 4  ;;  %s18_s13 = int_to_ptr.vmem [resolvable:$true] %s17_s13  ;;  %s27_s15 = int_to_ptr.vmem [resolvable:$true] %s26_s15 }
   0x4   :  { %s1466_s16 = scalar_lea.vmem %s18_s13, 288  ;;  %p1471_p1 = scmp.lt.s32.totalorder %s18_s13, %s18_s13 }
   0x5   :  { %p1467_p0 = scmp.ne.s32.totalorder %s18_s13, %s1466_s16  ;;  %p1472_p2 = scmp.lt.s32.totalorder %s1466_s16, %s1466_s16 }
   0x7   :  { %p1473_p3 = por %p1472_p2, %p1471_p1 }
   0x9   :  { %p1474_p4 = pnand %p1473_p3, %p1467_p0 }
   0xb   :  { %1477 = shalt.err (!%p1474_p4)
}
   0xc   :  { %20 = dma.hbm_to_vmem [thread:$0]  %s1631_s0, 288, %s18_s13, [#allocation3]  }
   0xd   :  { %s1486_s19 = scalar_lea.vmem %s27_s15, 13824  ;;  %p1491_p6 = scmp.lt.s32.totalorder %s27_s15, %s27_s15 }
   0xe   :  { %p1487_p5 = scmp.ne.s32.totalorder %s27_s15, %s1486_s19  ;;  %p1492_p7 = scmp.lt.s32.totalorder %s1486_s19, %s1486_s19 }
  0x10   :  { %p1493_p8 = por %p1492_p7, %p1491_p6 }
  0x12   :  { %p1494_p9 = pnand %p1493_p8, %p1487_p5 }
  0x14   :  { %1497 = shalt.err (!%p1494_p9)
}
  0x15   :  { %s1526_s20 = smov 1152   ;;  %s1527_s21 = smov 72  }
  0x16   :  { %32 = dma.hbm_to_vmem [thread:$0]  %s1632_s1, 13824, %s27_s15, [#allocation6], %s1526_s20, %s1526_s20, %s1527_s21  }
  0x17   :  { %1518 = dma.done.wait [#allocation3], 288  }
  0x18   :  { %1519 = vsyncadd [#allocation3], 4294967008 }
  0x19   :  { %1520 = dma.done.wait [#allocation6], 13824  }
  0x1a   :  { %1521 = vsyncadd [#allocation6], 4294953472  ;;  %v1296_v0 = vld [vmem:[#allocation5 + $0x2d4] ss:$72 sps:$4 sm:$0xff]   ;;  %v1298_v1 = vld [vmem:[#allocation5 + $0x2d0] ss:$72 sps:$4 sm:$0xff]   ;;  %v48_v6 = vlaneseq }
  0x1b   :  { %809 = vmatprep.subr.bf16.mxu0 %v1296_v0  ;;  %v1299_v2 = vld [vmem:[#allocation5 + $0x2dc] ss:$72 sps:$4 sm:$0xff]   ;;  %v1301_v3 = vld [vmem:[#allocation5 + $0x2d8] ss:$72 sps:$4 sm:$0xff]   ;;  %v1305_v5 = vld [vmem:[#allocation5 + $0x24c] ss:$72 sps:$4 sm:$0xff]  }
  0x1c   :  { %810 = vmatpush1.bf16.xpose.msra.mxu0 %v1298_v1  ;;  %v1302_v4 = vld [vmem:[#allocation5 + $0x244] ss:$72 sps:$4 sm:$0xff]   ;;  %849 = vmatprep.subr.bf16.mxu1 %v1299_v2  ;;  %v1304_v7 = vld [vmem:[#allocation5 + $0x240] ss:$72 sps:$4 sm:$0xff]   ;;  %v1308_v8 = vld [vmem:[#allocation5 + $0x1b4] ss:$72 sps:$4 sm:$0xff]  }
  0x1d   :  { %850 = vmatpush1.bf16.xpose.msra.mxu1 %v1301_v3  ;;  %811 = vmatprep.subr.bf16.mxu0 %v1302_v4  ;;  %v1307_v9 = vld [vmem:[#allocation5 + $0x248] ss:$72 sps:$4 sm:$0xff]   ;;  %v1555_v10 = vshrl.u32 %v48_v6, 7  ;;  %v1311_v11 = vld [vmem:[#allocation5 + $0x1bc] ss:$72 sps:$4 sm:$0xff]   ;;  %vm1165_vm0 = vcmask 778240  }
  0x1e   :  { %851 = vmatprep.subr.bf16.mxu1 %v1305_v5  ;;  %v1310_v16 = vld [vmem:[#allocation5 + $0x1b0] ss:$72 sps:$4 sm:$0xff]   ;;  %v1314_v17 = vld [vmem:[#allocation5 + $0x124] ss:$72 sps:$4 sm:$0xff]   ;;  %v1316_v27 = vld [vmem:[#allocation5 + $0x120] ss:$72 sps:$4 sm:$0xff]  }
  0x1f   :  { %v1558_v12 = vsub.s32 1, %v1555_v10  ;;  %v62_v13 = vsub.s32 3, %v1555_v10  ;;  %v66_v14 = vsub.s32 4, %v1555_v10  ;;  %v74_v15 = vsub.s32 6, %v1555_v10  ;;  %v42_v18 = vld [vmem:[#allocation2] sm:$0xff]  ;;  %v1587_v59 = vld [vmem:[#allocation2 + $0x8] sm:$0xff] }
  0x20   :  { %v1313_v19 = vld [vmem:[#allocation5 + $0x1b8] ss:$72 sps:$4 sm:$0xff]   ;;  %v1317_v22 = vld [vmem:[#allocation5 + $0x12c] ss:$72 sps:$4 sm:$0xff]   ;;  %v1319_v29 = vld [vmem:[#allocation5 + $0x128] ss:$72 sps:$4 sm:$0xff]  }
  0x21   :  { %v55_v20 = vrot.slane %v42_v18, %v1558_v12  ;;  %v63_v21 = vrot.slane %v42_v18, %v62_v13  ;;  %v1568_v23 = vrot.slane %v42_v18, %v66_v14  ;;  %v1572_v24 = vrot.slane %v42_v18, %v74_v15  ;;  %v1320_v28 = vld [vmem:[#allocation5 + $0x94] ss:$72 sps:$4 sm:$0xff]   ;;  %v1322_v31 = vld [vmem:[#allocation5 + $0x90] ss:$72 sps:$4 sm:$0xff]   ;;  %v1326_v32 = vld [vmem:[#allocation5 + $0x4] ss:$72 sps:$4 sm:$0xff]  }
  0x22   :  { %v1323_v30 = vld [vmem:[#allocation5 + $0x9c] ss:$72 sps:$4 sm:$0xff]   ;;  %v1325_v33 = vld [vmem:[#allocation5 + $0x98] ss:$72 sps:$4 sm:$0xff]   ;;  %v1329_v34 = vld [vmem:[#allocation5 + $0xc] ss:$72 sps:$4 sm:$0xff]   ;;  %v1592_v60 = vrot.slane %v1587_v59, %v66_v14  ;;  %v1597_v63 = vrot.slane %v1587_v59, %v74_v15 }
  0x23   :  { %v139_v25 = vpack.c.bf16 %v55_v20, %v55_v20  ;;  %v141_v26 = vpack.c.bf16 %v63_v21, %v63_v21  ;;  %v1575_v35 = vsub.s32 0, %v1555_v10  ;;  %v1328_v36 = vld [vmem:[#allocation5] ss:$72 sps:$4 sm:$0xff]   ;;  %v70_v37 = vsub.s32 5, %v1555_v10  ;;  %v1334_v38 = vld [vmem:[#allocation5 + $0x2e4] ss:$72 sps:$4 sm:$0xff]  }
  0x24   :  { %812 = vmatpush1.bf16.xpose.msra.mxu0 %v1304_v7  ;;  %v58_v39 = vsub.s32 2, %v1555_v10  ;;  %v1331_v40 = vld [vmem:[#allocation5 + $0x8] ss:$72 sps:$4 sm:$0xff]   ;;  %v78_v41 = vsub.s32 7, %v1555_v10  ;;  %v1337_v43 = vld [vmem:[#allocation5 + $0x2ec] ss:$72 sps:$4 sm:$0xff]  }
  0x25   :  { %813 = vmatprep.subr.bf16.mxu0 %v1308_v8  ;;  %852 = vmatpush1.bf16.xpose.msra.mxu1 %v1307_v9  ;;  %v51_v42 = vrot.slane %v42_v18, %v1575_v35  ;;  %v71_v44 = vrot.slane %v42_v18, %v70_v37  ;;  %v1332_v48 = vld [vmem:[#allocation5 + $0x2e0] ss:$72 sps:$4 sm:$0xff]   ;;  %v1340_v51 = vld [vmem:[#allocation5 + $0x254] ss:$72 sps:$4 sm:$0xff]   ;;  %v1338_v55 = vld [vmem:[#allocation5 + $0x250] ss:$72 sps:$4 sm:$0xff]  }
  0x26   :  { %853 = vmatprep.subr.bf16.mxu1 %v1311_v11  ;;  %837 = vmatprep.mubr.bf16.mxu0 %v139_v25  ;;  %v59_v45 = vrot.slane %v42_v18, %v58_v39  ;;  %v79_v46 = vrot.slane %v42_v18, %v78_v41  ;;  %v1335_v52 = vld [vmem:[#allocation5 + $0x2e8] ss:$72 sps:$4 sm:$0xff]   ;;  %v1343_v54 = vld [vmem:[#allocation5 + $0x25c] ss:$72 sps:$4 sm:$0xff]   ;;  %v1341_v57 = vld [vmem:[#allocation5 + $0x258] ss:$72 sps:$4 sm:$0xff]   ;;  %v95_v18 = vrot.slane %v1587_v59, %v62_v13 }
  0x27   :  { %877 = vmatprep.mubr.bf16.mxu1 %v141_v26  ;;  %v138_v47 = vpack.c.bf16 %v51_v42, %v51_v42  ;;  %v143_v49 = vpack.c.bf16 %v71_v44, %v71_v44  ;;  %v1346_v56 = vld [vmem:[#allocation5 + $0x1c4] ss:$72 sps:$4 sm:$0xff]   ;;  %v1344_v61 = vld [vmem:[#allocation5 + $0x1c0] ss:$72 sps:$4 sm:$0xff]   ;;  %v1352_v62 = vld [vmem:[#allocation5 + $0x134] ss:$72 sps:$4 sm:$0xff]  }
  0x28   :  { %v140_v50 = vpack.c.bf16 %v59_v45, %v59_v45  ;;  %v145_v53 = vpack.c.bf16 %v79_v46, %v79_v46  ;;  %v1349_v58 = vld [vmem:[#allocation5 + $0x1cc] ss:$72 sps:$4 sm:$0xff]   ;;  %v1347_v0 = vld [vmem:[#allocation5 + $0x1c8] ss:$72 sps:$4 sm:$0xff]   ;;  %v1355_v1 = vld [vmem:[#allocation5 + $0x13c] ss:$72 sps:$4 sm:$0xff]  }
  0x29   :  { %v1350_v2 = vld [vmem:[#allocation5 + $0x130] ss:$72 sps:$4 sm:$0xff]   ;;  %v1358_v3 = vld [vmem:[#allocation5 + $0xa4] ss:$72 sps:$4 sm:$0xff]   ;;  %v1356_v6 = vld [vmem:[#allocation5 + $0xa0] ss:$72 sps:$4 sm:$0xff]  }
  0x2a   :  { %v1353_v4 = vld [vmem:[#allocation5 + $0x138] ss:$72 sps:$4 sm:$0xff]   ;;  %v1361_v5 = vld [vmem:[#allocation5 + $0xac] ss:$72 sps:$4 sm:$0xff]   ;;  %v1359_v8 = vld [vmem:[#allocation5 + $0xa8] ss:$72 sps:$4 sm:$0xff]  }
  0x2b   :  { %v1364_v7 = vld [vmem:[#allocation5 + $0x14] ss:$72 sps:$4 sm:$0xff]   ;;  %v1362_v11 = vld [vmem:[#allocation5 + $0x10] ss:$72 sps:$4 sm:$0xff]   ;;  %v1376_v25 = vld [vmem:[#allocation5 + $0x264] ss:$72 sps:$4 sm:$0xff]  }
  0x2c   :  { %814 = vmatpush1.bf16.xpose.msra.mxu0 %v1310_v16  ;;  %v1367_v9 = vld [vmem:[#allocation5 + $0x1c] ss:$72 sps:$4 sm:$0xff]   ;;  %v1365_v15 = vld [vmem:[#allocation5 + $0x18] ss:$72 sps:$4 sm:$0xff]   ;;  %v1403_v45 = vld [vmem:[#allocation5 + $0x2c] ss:$72 sps:$4 sm:$0xff]  }
  0x2d   :  { %815 = vmatprep.subr.bf16.mxu0 %v1314_v17  ;;  %854 = vmatpush1.bf16.xpose.msra.mxu1 %v1313_v19  ;;  %v1370_v14 = vld [vmem:[#allocation5 + $0x2f4] ss:$72 sps:$4 sm:$0xff]   ;;  %v87_v17 = vrot.slane %v1587_v59, %v1558_v12  ;;  %v142_v19 = vpack.c.bf16 %v1568_v23, %v1568_v23  ;;  %v1368_v20 = vld [vmem:[#allocation5 + $0x2f0] ss:$72 sps:$4 sm:$0xff]   ;;  %v1374_v13 = vld [vmem:[#allocation5 + $0x260] ss:$72 sps:$4 sm:$0xff]  }
  0x2e   :  { %855 = vmatprep.subr.bf16.mxu1 %v1317_v22  ;;  %v1373_v16 = vld [vmem:[#allocation5 + $0x2fc] ss:$72 sps:$4 sm:$0xff]   ;;  %v144_v22 = vpack.c.bf16 %v1572_v24, %v1572_v24  ;;  %v1371_v26 = vld [vmem:[#allocation5 + $0x2f8] ss:$72 sps:$4 sm:$0xff]  }
  0x2f   :  { %v147_v21 = vpack.c.bf16 %v87_v17, %v87_v17  ;;  %v1382_v23 = vld [vmem:[#allocation5 + $0x1d4] ss:$72 sps:$4 sm:$0xff]   ;;  %v1380_v24 = vld [vmem:[#allocation5 + $0x1d0] ss:$72 sps:$4 sm:$0xff]   ;;  %v1398_v46 = vld [vmem:[#allocation5 + $0x20] ss:$72 sps:$4 sm:$0xff]  }
  0x30   :  { %v1392_v42 = vld [vmem:[#allocation5 + $0xb0] ss:$72 sps:$4 sm:$0xff]   ;;  %v44_v17 = vld [vmem:[#allocation2 + $0x10] sm:$0x3] }
  0x31   :  { %v1395_v44 = vld [vmem:[#allocation5 + $0xb8] ss:$72 sps:$4 sm:$0xff]  }
  0x32   :  { %v1410_v10 = vld [vmem:[#allocation5 + $0x270] ss:$72 sps:$4 sm:$0xff]  }
  0x34   :  { %816 = vmatpush1.bf16.xpose.msra.mxu0 %v1316_v27  ;;  %v149_v27 = vpack.c.bf16 %v95_v18, %v95_v18  ;;  %v1437_v18 = vld [vmem:[#allocation5 + $0x38] ss:$72 sps:$4 sm:$0xff]  }
  0x35   :  { %817 = vmatprep.subr.bf16.mxu0 %v1320_v28  ;;  %856 = vmatpush1.bf16.xpose.msra.mxu1 %v1319_v29  ;;  %v1379_v28 = vld [vmem:[#allocation5 + $0x26c] ss:$72 sps:$4 sm:$0xff]   ;;  %v1377_v29 = vld [vmem:[#allocation5 + $0x268] ss:$72 sps:$4 sm:$0xff]  }
  0x36   :  { %857 = vmatprep.subr.bf16.mxu1 %v1323_v30  ;;  %v1385_v30 = vld [vmem:[#allocation5 + $0x1dc] ss:$72 sps:$4 sm:$0xff]  }
  0x3c   :  { %818 = vmatpush1.bf16.xpose.msra.mxu0 %v1322_v31  ;;  %v1388_v31 = vld [vmem:[#allocation5 + $0x144] ss:$72 sps:$4 sm:$0xff]  }
  0x3d   :  { %819 = vmatprep.subr.bf16.mxu0 %v1326_v32  ;;  %858 = vmatpush1.bf16.xpose.msra.mxu1 %v1325_v33  ;;  %v1383_v32 = vld [vmem:[#allocation5 + $0x1d8] ss:$72 sps:$4 sm:$0xff]   ;;  %v1391_v33 = vld [vmem:[#allocation5 + $0x14c] ss:$72 sps:$4 sm:$0xff]  }
  0x3e   :  { %859 = vmatprep.subr.bf16.mxu1 %v1329_v34  ;;  %v1386_v34 = vld [vmem:[#allocation5 + $0x140] ss:$72 sps:$4 sm:$0xff]  }
  0x44   :  { %820 = vmatpush1.bf16.xpose.msra.mxu0 %v1328_v36  ;;  %v1394_v36 = vld [vmem:[#allocation5 + $0xb4] ss:$72 sps:$4 sm:$0xff]  }
  0x45   :  { %889 = vmatprep.subr.bf16.mxu0 %v1334_v38  ;;  %860 = vmatpush1.bf16.xpose.msra.mxu1 %v1331_v40  ;;  %v1389_v38 = vld [vmem:[#allocation5 + $0x148] ss:$72 sps:$4 sm:$0xff]   ;;  %v1397_v40 = vld [vmem:[#allocation5 + $0xbc] ss:$72 sps:$4 sm:$0xff]  }
  0x46   :  { %929 = vmatprep.subr.bf16.mxu1 %v1337_v43  ;;  %v1400_v43 = vld [vmem:[#allocation5 + $0x24] ss:$72 sps:$4 sm:$0xff]  }
  0x4b   :  { %838 = vmatmul.mubr.bf16.vlgmr.msra.gmra.mxu0 %v138_v47  ;;  %v1406_v47 = vld [vmem:[#allocation5 + $0x304] ss:$72 sps:$4 sm:$0xff]  }
  0x4c   :  { %890 = vmatpush1.bf16.xpose.msra.mxu0 %v1332_v48  ;;  %917 = vmatprep.mubr.bf16.mxu0 %v143_v49  ;;  %v1401_v48 = vld [vmem:[#allocation5 + $0x28] ss:$72 sps:$4 sm:$0xff]   ;;  %v83_v49 = vrot.slane %v1587_v59, %v1575_v35 }
  0x4d   :  { %878 = vmatmul.mubr.bf16.vlgmr.msra.gmra.mxu1 %v140_v50  ;;  %891 = vmatprep.subr.bf16.mxu0 %v1340_v51  ;;  %v1409_v50 = vld [vmem:[#allocation5 + $0x30c] ss:$72 sps:$4 sm:$0xff]   ;;  %v103_v51 = vrot.slane %v1587_v59, %v70_v37  ;;  %v1415_v37 = vld [vmem:[#allocation5 + $0x27c] ss:$72 sps:$4 sm:$0xff]  }
  0x4e   :  { %930 = vmatpush1.bf16.xpose.msra.mxu1 %v1335_v52  ;;  %957 = vmatprep.mubr.bf16.mxu1 %v145_v53  ;;  %v91_v52 = vrot.slane %v1587_v59, %v58_v39  ;;  %v111_v53 = vrot.slane %v1587_v59, %v78_v41  ;;  %v1418_v39 = vld [vmem:[#allocation5 + $0x1e4] ss:$72 sps:$4 sm:$0xff]   ;;  %v1413_v41 = vld [vmem:[#allocation5 + $0x278] ss:$72 sps:$4 sm:$0xff]  }
  0x4f   :  { %931 = vmatprep.subr.bf16.mxu1 %v1343_v54  ;;  %v146_v54 = vpack.c.bf16 %v83_v49, %v83_v49  ;;  %v1421_v59 = vld [vmem:[#allocation5 + $0x1ec] ss:$72 sps:$4 sm:$0xff]  }
  0x54   :  { %892 = vmatpush1.bf16.xpose.msra.mxu0 %v1338_v55  ;;  %v1404_v55 = vld [vmem:[#allocation5 + $0x300] ss:$72 sps:$4 sm:$0xff]  }
  0x55   :  { %893 = vmatprep.subr.bf16.mxu0 %v1346_v56  ;;  %v151_v56 = vpack.c.bf16 %v103_v51, %v103_v51 }
  0x56   :  { %932 = vmatpush1.bf16.xpose.msra.mxu1 %v1341_v57  ;;  %v148_v57 = vpack.c.bf16 %v91_v52, %v91_v52 }
  0x57   :  { %933 = vmatprep.subr.bf16.mxu1 %v1349_v58  ;;  %v1412_v58 = vld [vmem:[#allocation5 + $0x274] ss:$72 sps:$4 sm:$0xff]  }
  0x5c   :  { %894 = vmatpush1.bf16.xpose.msra.mxu0 %v1344_v61  ;;  %v1407_v61 = vld [vmem:[#allocation5 + $0x308] ss:$72 sps:$4 sm:$0xff]  }
  0x5d   :  { %895 = vmatprep.subr.bf16.mxu0 %v1352_v62  ;;  %v153_v62 = vpack.c.bf16 %v111_v53, %v111_v53 }
  0x5e   :  { %934 = vmatpush1.bf16.xpose.msra.mxu1 %v1347_v0  ;;  %v1416_v0 = vld [vmem:[#allocation5 + $0x1e0] ss:$72 sps:$4 sm:$0xff]  }
  0x5f   :  { %935 = vmatprep.subr.bf16.mxu1 %v1355_v1  ;;  %v1424_v1 = vld [vmem:[#allocation5 + $0x154] ss:$72 sps:$4 sm:$0xff]  }
  0x64   :  { %896 = vmatpush1.bf16.xpose.msra.mxu0 %v1350_v2  ;;  %v1419_v2 = vld [vmem:[#allocation5 + $0x1e8] ss:$72 sps:$4 sm:$0xff]  }
  0x65   :  { %897 = vmatprep.subr.bf16.mxu0 %v1358_v3  ;;  %v1427_v3 = vld [vmem:[#allocation5 + $0x15c] ss:$72 sps:$4 sm:$0xff]  }
  0x66   :  { %936 = vmatpush1.bf16.xpose.msra.mxu1 %v1353_v4  ;;  %v1422_v4 = vld [vmem:[#allocation5 + $0x150] ss:$72 sps:$4 sm:$0xff]  }
  0x67   :  { %937 = vmatprep.subr.bf16.mxu1 %v1361_v5  ;;  %v1430_v5 = vld [vmem:[#allocation5 + $0xc4] ss:$72 sps:$4 sm:$0xff]  }
  0x6c   :  { %898 = vmatpush1.bf16.xpose.msra.mxu0 %v1356_v6  ;;  %v1425_v6 = vld [vmem:[#allocation5 + $0x158] ss:$72 sps:$4 sm:$0xff]  }
  0x6d   :  { %899 = vmatprep.subr.bf16.mxu0 %v1364_v7  ;;  %v1433_v7 = vld [vmem:[#allocation5 + $0xcc] ss:$72 sps:$4 sm:$0xff]  }
  0x6e   :  { %938 = vmatpush1.bf16.xpose.msra.mxu1 %v1359_v8  ;;  %v1428_v8 = vld [vmem:[#allocation5 + $0xc0] ss:$72 sps:$4 sm:$0xff]  }
  0x6f   :  { %939 = vmatprep.subr.bf16.mxu1 %v1367_v9  ;;  %v1436_v9 = vld [vmem:[#allocation5 + $0x34] ss:$72 sps:$4 sm:$0xff]  }
  0x74   :  { %900 = vmatpush1.bf16.xpose.msra.mxu0 %v1362_v11  ;;  %v1431_v11 = vld [vmem:[#allocation5 + $0xc8] ss:$72 sps:$4 sm:$0xff]  }
  0x75   :  { %969 = vmatprep.subr.bf16.mxu0 %v1370_v14  ;;  %v1439_v14 = vld [vmem:[#allocation5 + $0x3c] ss:$72 sps:$4 sm:$0xff]  }
  0x76   :  { %940 = vmatpush1.bf16.xpose.msra.mxu1 %v1365_v15  ;;  %v1434_v15 = vld [vmem:[#allocation5 + $0x30] ss:$72 sps:$4 sm:$0xff]  }
  0x77   :  { %1009 = vmatprep.subr.bf16.mxu1 %v1373_v16  ;;  %v1442_v16 = vld [vmem:[#allocation5 + $0x314] ss:$72 sps:$4 sm:$0xff]  }
  0x7b   :  { %918 = vmatmul.mubr.bf16.vlgmr.msra.gmra.mxu0 %v142_v19  ;;  %v119_v19 = vrot.slane %v44_v17, %v1558_v12  ;;  %v1446_v12 = vld [vmem:[#allocation5 + $0x1f0] ss:$72 sps:$4 sm:$0xff]  }
  0x7c   :  { %970 = vmatpush1.bf16.xpose.msra.mxu0 %v1368_v20  ;;  %997 = vmatprep.mubr.bf16.mxu0 %v147_v21  ;;  %v150_v20 = vpack.c.bf16 %v1592_v60, %v1592_v60  ;;  %v1440_v21 = vld [vmem:[#allocation5 + $0x310] ss:$72 sps:$4 sm:$0xff]   ;;  %v1449_v60 = vld [vmem:[#allocation5 + $0x160] ss:$72 sps:$4 sm:$0xff]  }
  0x7d   :  { %958 = vmatmul.mubr.bf16.vlgmr.msra.gmra.mxu1 %v144_v22  ;;  %971 = vmatprep.subr.bf16.mxu0 %v1376_v25  ;;  %v155_v22 = vpack.c.bf16 %v119_v19, %v119_v19  ;;  %v152_v25 = vpack.c.bf16 %v1597_v63, %v1597_v63  ;;  %v1457_v63 = vld [vmem:[#allocation5 + $0x44] ss:$72 sps:$4 sm:$0xff]  }
  0x7e   :  { %1010 = vmatpush1.bf16.xpose.msra.mxu1 %v1371_v26  ;;  %1037 = vmatprep.mubr.bf16.mxu1 %v149_v27  ;;  %v1445_v26 = vld [vmem:[#allocation5 + $0x284] ss:$72 sps:$4 sm:$0xff]   ;;  %v1443_v27 = vld [vmem:[#allocation5 + $0x280] ss:$72 sps:$4 sm:$0xff]  }
  0x7f   :  { %1011 = vmatprep.subr.bf16.mxu1 %v1379_v28  ;;  %v1448_v28 = vld [vmem:[#allocation5 + $0x1f4] ss:$72 sps:$4 sm:$0xff]  }
  0x84   :  { %972 = vmatpush1.bf16.xpose.msra.mxu0 %v1374_v13  ;;  %v1451_v13 = vld [vmem:[#allocation5 + $0x164] ss:$72 sps:$4 sm:$0xff]  }
  0x85   :  { %973 = vmatprep.subr.bf16.mxu0 %v1382_v23  ;;  %v1454_v23 = vld [vmem:[#allocation5 + $0xd4] ss:$72 sps:$4 sm:$0xff]  }
  0x86   :  { %1012 = vmatpush1.bf16.xpose.msra.mxu1 %v1377_v29  ;;  %v1452_v29 = vld [vmem:[#allocation5 + $0xd0] ss:$72 sps:$4 sm:$0xff]  }
  0x87   :  { %1013 = vmatprep.subr.bf16.mxu1 %v1385_v30  ;;  %v1455_v30 = vld [vmem:[#allocation5 + $0x40] ss:$72 sps:$4 sm:$0xff]  }
  0x8c   :  { %974 = vmatpush1.bf16.xpose.msra.mxu0 %v1380_v24  ;;  %v115_v24 = vrot.slane %v44_v17, %v1575_v35 }
  0x8d   :  { %975 = vmatprep.subr.bf16.mxu0 %v1388_v31 }
  0x8e   :  { %1014 = vmatpush1.bf16.xpose.msra.mxu1 %v1383_v32  ;;  %v154_v31 = vpack.c.bf16 %v115_v24, %v115_v24  ;;  %v264_v32 = vld [vmem:[%s1633_s2] sm:$0x1]  ;;  %s1528_s2 = smov [#allocation7]  }
  0x8f   :  { %1015 = vmatprep.subr.bf16.mxu1 %v1391_v33  ;;  %s1173_s24 = sshll.u32 %s1528_s2, 4  ;;  %s1174_s24 = int_to_ptr.vmem [resolvable:$true] %s1173_s24 }
  0x90   :  { %s1498_s25 = scalar_lea.vmem %s1174_s24, 16  ;;  %s1502_s26 = scalar_lea.vmem %s1174_s24, 32 }
  0x91   :  { %p1499_p10 = scmp.ne.s32.totalorder %s1174_s24, %s1498_s25  ;;  %p1503_p11 = scmp.lt.s32.totalorder %s1174_s24, %s1174_s24 }
  0x92   :  { %p1504_p12 = scmp.lt.s32.totalorder %s1502_s26, %s1498_s25 }
  0x94   :  { %976 = vmatpush1.bf16.xpose.msra.mxu0 %v1386_v34  ;;  %p1505_p13 = por %p1504_p12, %p1503_p11 }
  0x95   :  { %977 = vmatprep.subr.bf16.mxu0 %v1394_v36 }
  0x96   :  { %1016 = vmatpush1.bf16.xpose.msra.mxu1 %v1389_v38  ;;  %p1506_p0 = pnand %p1505_p13, %p1499_p10 }
  0x97   :  { %1017 = vmatprep.subr.bf16.mxu1 %v1397_v40 }
  0x9c   :  { %978 = vmatpush1.bf16.xpose.msra.mxu0 %v1392_v42 }
  0x9d   :  { %979 = vmatprep.subr.bf16.mxu0 %v1400_v43 }
  0x9e   :  { %1018 = vmatpush1.bf16.xpose.msra.mxu1 %v1395_v44 }
  0x9f   :  { %1019 = vmatprep.subr.bf16.mxu1 %v1403_v45 }
  0xa4   :  { %980 = vmatpush1.bf16.xpose.msra.mxu0 %v1398_v46 }
  0xa5   :  { %1049 = vmatprep.subr.bf16.mxu0 %v1406_v47 }
  0xa6   :  { %1020 = vmatpush1.bf16.xpose.msra.mxu1 %v1401_v48 }
  0xa7   :  { %1089 = vmatprep.subr.bf16.mxu1 %v1409_v50 }
  0xab   :  { %998 = vmatmul.mubr.bf16.vlgmr.msra.gmra.mxu0 %v146_v54 }
  0xac   :  { %1050 = vmatpush1.bf16.xpose.msra.mxu0 %v1404_v55  ;;  %1077 = vmatprep.mubr.bf16.mxu0 %v151_v56 }
  0xad   :  { %1038 = vmatmul.mubr.bf16.vlgmr.msra.gmra.mxu1 %v148_v57  ;;  %1051 = vmatprep.subr.bf16.mxu0 %v1412_v58 }
  0xae   :  { %1090 = vmatpush1.bf16.xpose.msra.mxu1 %v1407_v61  ;;  %1117 = vmatprep.mubr.bf16.mxu1 %v153_v62 }
  0xaf   :  { %1091 = vmatprep.subr.bf16.mxu1 %v1415_v37 }
  0xb4   :  { %1052 = vmatpush1.bf16.xpose.msra.mxu0 %v1410_v10 }
  0xb5   :  { %1053 = vmatprep.subr.bf16.mxu0 %v1418_v39 }
  0xb6   :  { %1092 = vmatpush1.bf16.xpose.msra.mxu1 %v1413_v41 }
  0xb7   :  { %1093 = vmatprep.subr.bf16.mxu1 %v1421_v59 }
  0xbc   :  { %1054 = vmatpush1.bf16.xpose.msra.mxu0 %v1416_v0 }
  0xbd   :  { %1055 = vmatprep.subr.bf16.mxu0 %v1424_v1 }
  0xbe   :  { %1094 = vmatpush1.bf16.xpose.msra.mxu1 %v1419_v2 }
  0xbf   :  { %1095 = vmatprep.subr.bf16.mxu1 %v1427_v3 }
  0xc4   :  { %1056 = vmatpush1.bf16.xpose.msra.mxu0 %v1422_v4 }
  0xc5   :  { %1057 = vmatprep.subr.bf16.mxu0 %v1430_v5 }
  0xc6   :  { %1096 = vmatpush1.bf16.xpose.msra.mxu1 %v1425_v6 }
  0xc7   :  { %1097 = vmatprep.subr.bf16.mxu1 %v1433_v7 }
  0xcc   :  { %1058 = vmatpush1.bf16.xpose.msra.mxu0 %v1428_v8 }
  0xcd   :  { %1059 = vmatprep.subr.bf16.mxu0 %v1436_v9 }
  0xce   :  { %1098 = vmatpush1.bf16.xpose.msra.mxu1 %v1431_v11 }
  0xcf   :  { %1099 = vmatprep.subr.bf16.mxu1 %v1439_v14 }
  0xd4   :  { %1060 = vmatpush1.bf16.xpose.msra.mxu0 %v1434_v15 }
  0xd5   :  { %1129 = vmatprep.subr.bf16.mxu0 %v1442_v16 }
  0xd6   :  { %1100 = vmatpush1.bf16.xpose.msra.mxu1 %v1437_v18 }
  0xdb   :  { %1078 = vmatmul.mubr.bf16.vlgmr.msra.gmra.mxu0 %v150_v20 }
  0xdc   :  { %1130 = vmatpush1.bf16.xpose.msra.mxu0 %v1440_v21  ;;  %1157 = vmatprep.mubr.bf16.mxu0 %v155_v22 }
  0xdd   :  { %1118 = vmatmul.mubr.bf16.vlgmr.msra.gmra.mxu1 %v152_v25  ;;  %1131 = vmatprep.subr.bf16.mxu0 %v1445_v26 }
  0xe4   :  { %1132 = vmatpush1.bf16.xpose.msra.mxu0 %v1443_v27 }
  0xe5   :  { %1133 = vmatprep.subr.bf16.mxu0 %v1448_v28 }
  0xec   :  { %1134 = vmatpush1.bf16.xpose.msra.mxu0 %v1446_v12 }
  0xed   :  { %1135 = vmatprep.subr.bf16.mxu0 %v1451_v13 }
  0xf4   :  { %1136 = vmatpush1.bf16.xpose.msra.mxu0 %v1449_v60 }
  0xf5   :  { %1137 = vmatprep.subr.bf16.mxu0 %v1454_v23 }
  0xfc   :  { %1138 = vmatpush1.bf16.xpose.msra.mxu0 %v1452_v29 }
  0xfd   :  { %1139 = vmatprep.subr.bf16.mxu0 %v1457_v63 }
 0x104   :  { %1140 = vmatpush1.bf16.xpose.msra.mxu0 %v1455_v30 }
 0x10b   :  { %v839_v33 = vpop.f32.mrf.mxu0  ;;  %1158 = vmatmul.mubr.bf16.vlgmr.msra.gmra.mxu0 %v154_v31 }
 0x10c   :  { %v840_v34 = vadd.f32 %v839_v33, %v264_v32 }
 0x10d   :  { %v841_v36 = vpop.f32.mrf.mxu0  ;;  %v879_v38 = vpop.f32.mrf.mxu1 }
 0x10e   :  { %v880_v40 = vadd.f32 %v879_v38, %v840_v34 }
 0x10f   :  { %v842_v42 = vpop.f32.mrf.mxu0  ;;  %v881_v43 = vpop.f32.mrf.mxu1 }
 0x111   :  { %v843_v44 = vpop.f32.mrf.mxu0  ;;  %v882_v45 = vpop.f32.mrf.mxu1 }
 0x113   :  { %v883_v46 = vpop.f32.mrf.mxu1 }
 0x13b   :  { %v919_v47 = vpop.f32.mrf.mxu0 }
 0x13c   :  { %v920_v48 = vadd.f32 %v919_v47, %v880_v40 }
 0x13d   :  { %v921_v35 = vpop.f32.mrf.mxu0  ;;  %v959_v49 = vpop.f32.mrf.mxu1 }
 0x13e   :  { %v960_v50 = vadd.f32 %v959_v49, %v920_v48 }
 0x13f   :  { %v922_v51 = vpop.f32.mrf.mxu0  ;;  %v961_v52 = vpop.f32.mrf.mxu1 }
 0x141   :  { %v923_v53 = vpop.f32.mrf.mxu0  ;;  %v962_v54 = vpop.f32.mrf.mxu1 }
 0x143   :  { %v963_v55 = vpop.f32.mrf.mxu1 }
 0x16b   :  { %v999_v56 = vpop.f32.mrf.mxu0 }
 0x16c   :  { %v1000_v57 = vadd.f32 %v999_v56, %v960_v50 }
 0x16d   :  { %v1001_v58 = vpop.f32.mrf.mxu0  ;;  %v1039_v61 = vpop.f32.mrf.mxu1 }
 0x16e   :  { %v1040_v62 = vadd.f32 %v1039_v61, %v1000_v57 }
 0x16f   :  { %v1002_v37 = vpop.f32.mrf.mxu0  ;;  %v1041_v10 = vpop.f32.mrf.mxu1 }
 0x171   :  { %v1003_v39 = vpop.f32.mrf.mxu0  ;;  %v1042_v41 = vpop.f32.mrf.mxu1 }
 0x173   :  { %v1043_v59 = vpop.f32.mrf.mxu1 }
 0x19b   :  { %v1079_v0 = vpop.f32.mrf.mxu0 }
 0x19c   :  { %v1080_v8 = vadd.f32 %v1079_v0, %v1040_v62 }
 0x19d   :  { %v1081_v1 = vpop.f32.mrf.mxu0  ;;  %v1119_v2 = vpop.f32.mrf.mxu1 }
 0x19e   :  { %v1120_v9 = vadd.f32 %v1119_v2, %v1080_v8 }
 0x19f   :  { %v1082_v3 = vpop.f32.mrf.mxu0  ;;  %v1121_v4 = vpop.f32.mrf.mxu1 }
 0x1a1   :  { %v1083_v5 = vpop.f32.mrf.mxu0  ;;  %v1122_v6 = vpop.f32.mrf.mxu1 }
 0x1a3   :  { %v1123_v7 = vpop.f32.mrf.mxu1 }
 0x1cb   :  { %v1159_v11 = vpop.f32.mrf.mxu0 }
 0x1cc   :  { %v1160_v14 = vadd.f32 %v1159_v11, %v1120_v9 }
 0x1cd   :  { %v1161_v15 = vpop.f32.mrf.mxu0 }
 0x1ce   :  { %1166 = vst.msk [vmem:[#allocation7] sm:$0x1] %vm1165_vm0, %v1160_v14 }
 0x1cf   :  { %v1162_v16 = vpop.f32.mrf.mxu0 }
 0x1d0   :  { %1509 = shalt.err (!%p1506_p0)
}
 0x1d1   :  { %1176 = dma.vmem_to_hbm [thread:$0]  %s1174_s24, 16, %s1634_s3, [#allocation4]   ;;  %v1163_v17 = vpop.f32.mrf.mxu0 }
 0x1d2   :  { %1522 = dma.done.wait [#allocation4], 16  }
 0x1d3   :  { %1523 = vsyncadd [#allocation4], 4294967280 }
 0x1d4   :  { %1180 = vsyncpa [#allocation3], 1 }
 0x1d5   :  { %1181 = vsyncpa [#allocation6], 1 }
 0x1d6   :  { %1182 = vsyncpa [#allocation4], 1 }

</bundles_post_ra>
